<compile_context>
chip_gen: v6e
topology: v6e:2x2x1
jax: 0.10.0
libtpu: 0.0.40
codegen_flags: <defaults>
</compile_context>

<pallas_src>
import math
import functools

import jax
import jax.numpy as jnp
from jax import lax
from jax.experimental import pallas as pl
from jax.experimental.pallas import tpu as pltpu


def _mhsa_kernel(x_ref, wqkv_ref, bqkv_ref, wo_ref, bo_ref, ctx_ref, attn_ref,
                 *, head_dim):
    """One grid step == (one batch element, one head).

    x_ref:    (1, S, H)        bf16 VMEM
    wqkv_ref: (1, H, 3*hd)     bf16 VMEM  (this head's fused Q|K|V columns, pre-transposed,
                                           Q columns pre-scaled by 1/sqrt(hd))
    bqkv_ref: (1, 1, 3*hd)     f32  VMEM  (fused bias, Q part pre-scaled)
    wo_ref:   (1, hd, H)       bf16 VMEM  (this head's rows of out_proj.weight.T)
    bo_ref:   (1, H)           f32  VMEM
    ctx_ref:  (1, S, H)        f32 output, accumulated across the head grid axis
    attn_ref: (1, 1, S, S)     f32 output (this head's attention probabilities)
    """
    h = pl.program_id(1)

    x = x_ref[0]        # (S, H)      bf16
    w = wqkv_ref[0]     # (H, 3*hd)   bf16
    b = bqkv_ref[0]     # (1, 3*hd)   f32

    # Fused Q/K/V projection for this head: one MXU matmul, f32 accumulation.
    qkv = jnp.dot(x, w, preferred_element_type=jnp.float32) + b     # (S, 3*hd)

    q = qkv[:, :head_dim].astype(jnp.bfloat16)            # already scaled by 1/sqrt(hd)
    k = qkv[:, head_dim:2 * head_dim].astype(jnp.bfloat16)
    v = qkv[:, 2 * head_dim:].astype(jnp.bfloat16)

    # Scores: contract last axes of q and k (no explicit transpose of K).
    energy = lax.dot_general(
        q, k, dimension_numbers=(((1,), (1,)), ((), ())),
        preferred_element_type=jnp.float32)                # (S, S) f32

    # Numerically stable softmax (f32); denominator via EUP approx reciprocal.
    e = energy - jnp.max(energy, axis=-1, keepdims=True)
    p = jnp.exp(e)
    attn = p * pl.reciprocal(jnp.sum(p, axis=-1, keepdims=True), approx=True)

    attn_ref[0, 0] = attn                                  # attention probs output (f32)

    # Per-head context and its contribution to the output projection.
    ctx_h = jnp.dot(attn.astype(jnp.bfloat16), v,
                    preferred_element_type=jnp.float32)     # (S, hd) f32
    contrib = jnp.dot(ctx_h.astype(jnp.bfloat16), wo_ref[0],
                      preferred_element_type=jnp.float32)   # (S, H) f32

    @pl.when(h == 0)
    def _():
        # Initialize the accumulator with the out_proj bias on the first head.
        ctx_ref[0] = jnp.broadcast_to(bo_ref[...], ctx_ref.shape[1:])

    ctx_ref[0] = ctx_ref[0] + contrib


def multi_head_self_attention(hidden_states, params, *, num_heads):
    """hidden_states: (B, S, H) float32.

    Returns (context (B, S, H) f32, attention (B, nH, S, S) f32), matching the
    PyTorch module's eval-mode forward.
    """
    B, S, H = hidden_states.shape
    head_dim = H // num_heads
    assert head_dim * num_heads == H

    wq, bq = params["wq"], params["bq"]      # torch layout: (out, in)
    wk, bk = params["wk"], params["bk"]
    wv, bv = params["wv"], params["bv"]
    wo, bo = params["wo"], params["bo"]

    scale = 1.0 / math.sqrt(head_dim)

    # Pre-transpose to (in, out); fold the attention scale into Q weight + bias.
    wq_t = wq.T * scale
    wk_t = wk.T
    wv_t = wv.T
    bq_s = bq * scale

    # Per-head fused QKV weight: (num_heads, H, 3*head_dim), columns = [Q | K | V].
    def head_cols(w_t):                       # (H, H) -> (nH, H, hd)
        return w_t.reshape(H, num_heads, head_dim).transpose(1, 0, 2)

    def head_bias(b):                         # (H,) -> (nH, 1, hd)
        return b.reshape(num_heads, 1, head_dim)

    w_qkv = jnp.concatenate(
        [head_cols(wq_t), head_cols(wk_t), head_cols(wv_t)], axis=-1)   # (nH, H, 3hd)
    b_qkv = jnp.concatenate(
        [head_bias(bq_s), head_bias(bk), head_bias(bv)], axis=-1)       # (nH, 1, 3hd)

    # Out-proj pre-transposed and split by head along the input-feature rows.
    wo_heads = wo.T.reshape(num_heads, head_dim, H)                     # (nH, hd, H)
    bo2 = bo.reshape(1, H)

    # bf16 at the boundary: halves HBM/VMEM bytes and uses the bf16 MXU path.
    # Accumulation / softmax stay f32 inside the kernel.
    x_bf = hidden_states.astype(jnp.bfloat16)
    w_qkv_bf = w_qkv.astype(jnp.bfloat16)
    wo_bf = wo_heads.astype(jnp.bfloat16)

    kernel = functools.partial(_mhsa_kernel, head_dim=head_dim)

    grid_spec = pltpu.PrefetchScalarGridSpec(
        num_scalar_prefetch=0,
        grid=(B, num_heads),
        in_specs=[
            pl.BlockSpec((1, S, H), lambda b, h: (b, 0, 0)),              # x
            pl.BlockSpec((1, H, 3 * head_dim), lambda b, h: (h, 0, 0)),   # fused QKV weight
            pl.BlockSpec((1, 1, 3 * head_dim), lambda b, h: (h, 0, 0)),   # fused QKV bias
            pl.BlockSpec((1, head_dim, H), lambda b, h: (h, 0, 0)),       # out-proj rows
            pl.BlockSpec((1, H), lambda b, h: (0, 0)),                    # out-proj bias
        ],
        out_specs=[
            pl.BlockSpec((1, S, H), lambda b, h: (b, 0, 0)),              # context (accumulated over h)
            pl.BlockSpec((1, 1, S, S), lambda b, h: (b, h, 0, 0)),        # attention probs
        ],
    )

    ctx, attn = pl.pallas_call(
        kernel,
        out_shape=(
            jax.ShapeDtypeStruct((B, S, H), jnp.float32),
            jax.ShapeDtypeStruct((B, num_heads, S, S), jnp.float32),
        ),
        grid_spec=grid_spec,
        compiler_params=pltpu.CompilerParams(
            # Batch is parallel (megacore); heads is the accumulation axis (last).
            dimension_semantics=("parallel", "arbitrary")),
    )(x_bf, w_qkv_bf, b_qkv, wo_bf, bo2)
    return ctx, attn


def _init_linear(key, out_features, in_features):
    """Deterministic init matching torch.nn.Linear default (uniform ±1/sqrt(fan_in))."""
    kw, kb = jax.random.split(key)
    bound = 1.0 / math.sqrt(in_features)
    w = jax.random.uniform(kw, (out_features, in_features), jnp.float32, -bound, bound)
    b = jax.random.uniform(kb, (out_features,), jnp.float32, -bound, bound)
    return w, b


def _reference(hidden_states, params, *, num_heads):
    """Plain-JAX f32 reference mirroring the PyTorch forward (eval mode)."""
    B, S, H = hidden_states.shape
    hd = H // num_heads

    def lin(x, w, b):
        return x @ w.T + b

    q = lin(hidden_states, params["wq"], params["bq"]).reshape(B, S, num_heads, hd).transpose(0, 2, 1, 3)
    k = lin(hidden_states, params["wk"], params["bk"]).reshape(B, S, num_heads, hd).transpose(0, 2, 1, 3)
    v = lin(hidden_states, params["wv"], params["bv"]).reshape(B, S, num_heads, hd).transpose(0, 2, 1, 3)
    energy = jnp.einsum("bhqd,bhkd->bhqk", q, k) / math.sqrt(hd)
    attn = jax.nn.softmax(energy, axis=-1)
    ctx = jnp.einsum("bhqk,bhkd->bhqd", attn, v)
    ctx = ctx.transpose(0, 2, 1, 3).reshape(B, S, H)
    ctx = lin(ctx, params["wo"], params["bo"])
    return ctx, attn


if __name__ == "__main__":
    B, S, H = 2, 8, 32
    num_heads = 2

    root = jax.random.PRNGKey(0)
    kx, kq, kk, kv, ko = jax.random.split(root, 5)

    hidden_states = jax.random.normal(kx, (B, S, H), jnp.float32)

    wq, bq = _init_linear(kq, H, H)
    wk, bk = _init_linear(kk, H, H)
    wv, bv = _init_linear(kv, H, H)
    wo, bo = _init_linear(ko, H, H)
    params = dict(wq=wq, bq=bq, wk=wk, bk=bk, wv=wv, bv=bv, wo=wo, bo=bo)

    ctx, attn = multi_head_self_attention(hidden_states, params, num_heads=num_heads)
    jax.block_until_ready((ctx, attn))

    ctx_ref, attn_ref = _reference(hidden_states, params, num_heads=num_heads)
    # bf16 matmul operands + approx reciprocal -> loosened tolerances vs f32 reference.
    assert jnp.allclose(ctx, ctx_ref, atol=3e-2, rtol=3e-2), "context mismatch"
    assert jnp.allclose(attn, attn_ref, atol=2e-2, rtol=3e-2), "attention mismatch"

    print("KERNEL_OK")
</pallas_src>

<mosaic_0001>
module attributes {stable_mosaic.version = 11 : i64} {
  func.func @_mhsa_kernel(%arg0: i32, %arg1: i32, %arg2: memref<1x8x32xbf16, #tpu.memory_space<vmem>>, %arg3: memref<1x32x48xbf16, #tpu.memory_space<vmem>>, %arg4: memref<1x1x48xf32, #tpu.memory_space<vmem>>, %arg5: memref<1x16x32xbf16, #tpu.memory_space<vmem>>, %arg6: memref<1x32xf32, #tpu.memory_space<vmem>>, %arg7: memref<1x8x32xf32, #tpu.memory_space<vmem>>, %arg8: memref<1x1x8x8xf32, #tpu.memory_space<vmem>>) attributes {dimension_semantics = [#tpu.dimension_semantics<parallel>, #tpu.dimension_semantics<arbitrary>], iteration_bounds = array<i64: 2, 2>, scalar_prefetch = 0 : i64, scratch_operands = 0 : i64, tpu.core_type = #tpu.core_type<tc>, window_params = [{transform_indices = @transform_0, window_bounds = array<i64: 1, 8, 32>}, {transform_indices = @transform_1, window_bounds = array<i64: 1, 32, 48>}, {transform_indices = @transform_2, window_bounds = array<i64: 1, 1, 48>}, {transform_indices = @transform_3, window_bounds = array<i64: 1, 16, 32>}, {pipeline_mode = #tpu.pipeline_mode<synchronous>, transform_indices = @transform_4, window_bounds = array<i64: 1, 32>}, {transform_indices = @transform_5, window_bounds = array<i64: 1, 8, 32>}, {transform_indices = @transform_6, window_bounds = array<i64: 1, 1, 8, 8>}]} {
    %c0 = arith.constant 0 : index
    %c0_0 = arith.constant 0 : index
    %c0_1 = arith.constant 0 : index
    %0 = vector.load %arg2[%c0, %c0_0, %c0_1] : memref<1x8x32xbf16, #tpu.memory_space<vmem>>, vector<1x8x32xbf16>
    %1 = vector.shape_cast %0 : vector<1x8x32xbf16> to vector<8x32xbf16>
    %c0_2 = arith.constant 0 : index
    %c0_3 = arith.constant 0 : index
    %c0_4 = arith.constant 0 : index
    %2 = vector.load %arg3[%c0_2, %c0_3, %c0_4] : memref<1x32x48xbf16, #tpu.memory_space<vmem>>, vector<1x32x48xbf16>
    %3 = vector.shape_cast %2 : vector<1x32x48xbf16> to vector<32x48xbf16>
    %c0_5 = arith.constant 0 : index
    %c0_6 = arith.constant 0 : index
    %c0_7 = arith.constant 0 : index
    %4 = vector.load %arg4[%c0_5, %c0_6, %c0_7] : memref<1x1x48xf32, #tpu.memory_space<vmem>>, vector<1x1x48xf32>
    %5 = vector.shape_cast %4 : vector<1x1x48xf32> to vector<1x48xf32>
    %cst = arith.constant dense<0.000000e+00> : vector<8x48xf32>
    %6 = tpu.matmul %1, %3, %cst {dimension_numbers = #tpu.dot_dimension_numbers<[1], [0], [0], [1], [0, 0, 1, 1], [], []>} : vector<8x32xbf16>, vector<32x48xbf16>, vector<8x48xf32> -> vector<8x48xf32>
    %7 = vector.broadcast %5 : vector<1x48xf32> to vector<8x48xf32>
    %8 = arith.addf %6, %7 : vector<8x48xf32>
    %9 = vector.extract_strided_slice %8 {offsets = [0, 0], sizes = [8, 16], strides = [1, 1]} : vector<8x48xf32> to vector<8x16xf32>
    %10 = arith.truncf %9 : vector<8x16xf32> to vector<8x16xbf16>
    %11 = vector.extract_strided_slice %8 {offsets = [0, 16], sizes = [8, 16], strides = [1, 1]} : vector<8x48xf32> to vector<8x16xf32>
    %12 = arith.truncf %11 : vector<8x16xf32> to vector<8x16xbf16>
    %13 = vector.extract_strided_slice %8 {offsets = [0, 32], sizes = [8, 16], strides = [1, 1]} : vector<8x48xf32> to vector<8x16xf32>
    %14 = arith.truncf %13 : vector<8x16xf32> to vector<8x16xbf16>
    %cst_8 = arith.constant dense<0.000000e+00> : vector<8x8xf32>
    %15 = tpu.matmul %10, %12, %cst_8 {dimension_numbers = #tpu.dot_dimension_numbers<[1], [1], [0], [0], [0, 0, 1, 0], [], []>} : vector<8x16xbf16>, vector<8x16xbf16>, vector<8x8xf32> -> vector<8x8xf32>
    %cst_9 = arith.constant dense<0xFF800000> : vector<8xf32>
    %16 = vector.multi_reduction <maximumf>, %15, %cst_9 [1] : vector<8x8xf32> to vector<8xf32>
    %17 = vector.shape_cast %16 : vector<8xf32> to vector<8x1xf32>
    %18 = vector.broadcast %17 : vector<8x1xf32> to vector<8x8xf32>
    %19 = arith.subf %15, %18 : vector<8x8xf32>
    %20 = math.exp %19 : vector<8x8xf32>
    %cst_10 = arith.constant dense<0.000000e+00> : vector<8xf32>
    %21 = vector.multi_reduction <add>, %20, %cst_10 [1] : vector<8x8xf32> to vector<8xf32>
    %22 = vector.shape_cast %21 : vector<8xf32> to vector<8x1xf32>
    %23 = tpu.reciprocal %22 {approx = true} : vector<8x1xf32> -> vector<8x1xf32>
    %24 = vector.broadcast %23 : vector<8x1xf32> to vector<8x8xf32>
    %25 = arith.mulf %20, %24 : vector<8x8xf32>
    %c0_11 = arith.constant 0 : index
    %c0_12 = arith.constant 0 : index
    %c0_13 = arith.constant 0 : index
    %c0_14 = arith.constant 0 : index
    %26 = vector.load %arg8[%c0_11, %c0_12, %c0_13, %c0_14] : memref<1x1x8x8xf32, #tpu.memory_space<vmem>>, vector<1x1x8x8xf32>
    %27 = vector.shape_cast %26 : vector<1x1x8x8xf32> to vector<8x8xf32>
    %28 = vector.shape_cast %25 : vector<8x8xf32> to vector<1x1x8x8xf32>
    tpu.vector_store %arg8[%c0_11, %c0_12, %c0_13, %c0_14], %28 {strides = array<i32>} : memref<1x1x8x8xf32, #tpu.memory_space<vmem>>, vector<1x1x8x8xf32>,
    %29 = arith.truncf %25 : vector<8x8xf32> to vector<8x8xbf16>
    %cst_15 = arith.constant dense<0.000000e+00> : vector<8x16xf32>
    %30 = tpu.matmul %29, %14, %cst_15 {dimension_numbers = #tpu.dot_dimension_numbers<[1], [0], [0], [1], [0, 0, 1, 1], [], []>} : vector<8x8xbf16>, vector<8x16xbf16>, vector<8x16xf32> -> vector<8x16xf32>
    %31 = arith.truncf %30 : vector<8x16xf32> to vector<8x16xbf16>
    %c0_16 = arith.constant 0 : index
    %c0_17 = arith.constant 0 : index
    %c0_18 = arith.constant 0 : index
    %32 = vector.load %arg5[%c0_16, %c0_17, %c0_18] : memref<1x16x32xbf16, #tpu.memory_space<vmem>>, vector<1x16x32xbf16>
    %33 = vector.shape_cast %32 : vector<1x16x32xbf16> to vector<16x32xbf16>
    %cst_19 = arith.constant dense<0.000000e+00> : vector<8x32xf32>
    %34 = tpu.matmul %31, %33, %cst_19 {dimension_numbers = #tpu.dot_dimension_numbers<[1], [0], [0], [1], [0, 0, 1, 1], [], []>} : vector<8x16xbf16>, vector<16x32xbf16>, vector<8x32xf32> -> vector<8x32xf32>
    %c0_i32 = arith.constant 0 : i32
    %35 = arith.cmpi eq, %arg1, %c0_i32 : i32
    %36 = arith.extui %35 : i1 to i32
    %c0_i32_20 = arith.constant 0 : i32
    %37 = arith.cmpi ne, %36, %c0_i32_20 : i32
    scf.if %37 {
      %c0_27 = arith.constant 0 : index
      %c0_28 = arith.constant 0 : index
      %44 = vector.load %arg6[%c0_27, %c0_28] : memref<1x32xf32, #tpu.memory_space<vmem>>, vector<1x32xf32>
      %45 = vector.shape_cast %44 : vector<1x32xf32> to vector<1x32xf32>
      %46 = vector.broadcast %45 : vector<1x32xf32> to vector<8x32xf32>
      %c0_29 = arith.constant 0 : index
      %c0_30 = arith.constant 0 : index
      %c0_31 = arith.constant 0 : index
      %47 = vector.load %arg7[%c0_29, %c0_30, %c0_31] : memref<1x8x32xf32, #tpu.memory_space<vmem>>, vector<1x8x32xf32>
      %48 = vector.shape_cast %47 : vector<1x8x32xf32> to vector<8x32xf32>
      %49 = vector.shape_cast %46 : vector<8x32xf32> to vector<1x8x32xf32>
      tpu.vector_store %arg7[%c0_29, %c0_30, %c0_31], %49 {strides = array<i32>} : memref<1x8x32xf32, #tpu.memory_space<vmem>>, vector<1x8x32xf32>,
    } else {
    }
    %c0_21 = arith.constant 0 : index
    %c0_22 = arith.constant 0 : index
    %c0_23 = arith.constant 0 : index
    %38 = vector.load %arg7[%c0_21, %c0_22, %c0_23] : memref<1x8x32xf32, #tpu.memory_space<vmem>>, vector<1x8x32xf32>
    %39 = vector.shape_cast %38 : vector<1x8x32xf32> to vector<8x32xf32>
    %40 = arith.addf %39, %34 : vector<8x32xf32>
    %c0_24 = arith.constant 0 : index
    %c0_25 = arith.constant 0 : index
    %c0_26 = arith.constant 0 : index
    %41 = vector.load %arg7[%c0_24, %c0_25, %c0_26] : memref<1x8x32xf32, #tpu.memory_space<vmem>>, vector<1x8x32xf32>
    %42 = vector.shape_cast %41 : vector<1x8x32xf32> to vector<8x32xf32>
    %43 = vector.shape_cast %40 : vector<8x32xf32> to vector<1x8x32xf32>
    tpu.vector_store %arg7[%c0_24, %c0_25, %c0_26], %43 {strides = array<i32>} : memref<1x8x32xf32, #tpu.memory_space<vmem>>, vector<1x8x32xf32>,
    return
  }
  func.func @transform_0(%arg0: i32, %arg1: i32) -> (i32, i32, i32) {
    %c0_i32 = arith.constant 0 : i32
    %c0_i32_0 = arith.constant 0 : i32
    %c0_i32_1 = arith.constant 0 : i32
    return %arg0, %c0_i32, %c0_i32_0 : i32, i32, i32
  }
  func.func @transform_1(%arg0: i32, %arg1: i32) -> (i32, i32, i32) {
    %c0_i32 = arith.constant 0 : i32
    %c0_i32_0 = arith.constant 0 : i32
    %c0_i32_1 = arith.constant 0 : i32
    return %arg1, %c0_i32, %c0_i32_0 : i32, i32, i32
  }
  func.func @transform_2(%arg0: i32, %arg1: i32) -> (i32, i32, i32) {
    %c0_i32 = arith.constant 0 : i32
    %c0_i32_0 = arith.constant 0 : i32
    %c0_i32_1 = arith.constant 0 : i32
    return %arg1, %c0_i32, %c0_i32_0 : i32, i32, i32
  }
  func.func @transform_3(%arg0: i32, %arg1: i32) -> (i32, i32, i32) {
    %c0_i32 = arith.constant 0 : i32
    %c0_i32_0 = arith.constant 0 : i32
    %c0_i32_1 = arith.constant 0 : i32
    return %arg1, %c0_i32, %c0_i32_0 : i32, i32, i32
  }
  func.func @transform_4(%arg0: i32, %arg1: i32) -> (i32, i32) {
    %c0_i32 = arith.constant 0 : i32
    %c0_i32_0 = arith.constant 0 : i32
    %c0_i32_1 = arith.constant 0 : i32
    return %c0_i32, %c0_i32_0 : i32, i32
  }
  func.func @transform_5(%arg0: i32, %arg1: i32) -> (i32, i32, i32) {
    %c0_i32 = arith.constant 0 : i32
    %c0_i32_0 = arith.constant 0 : i32
    %c0_i32_1 = arith.constant 0 : i32
    return %arg0, %c0_i32, %c0_i32_0 : i32, i32, i32
  }
  func.func @transform_6(%arg0: i32, %arg1: i32) -> (i32, i32, i32, i32) {
    %c0_i32 = arith.constant 0 : i32
    %c0_i32_0 = arith.constant 0 : i32
    %c0_i32_1 = arith.constant 0 : i32
    return %arg0, %arg1, %c0_i32, %c0_i32_0 : i32, i32, i32, i32
  }
}

</mosaic_0001>

<bundles_post_ra>
// kernel: tpu_custom_call.1
= control target key start
LH: loop header
LB: loop body
LE: loop exit
PB: predicated region body
PF: predicated region fallthrough
CT: control target
= control target key end

     0   :  { %s1759_s0 = inlined_call_operand.hbm [shape: bf16[2,8,32], index: 0, kind: input, shape index: {}]   ;;  %s1760_s1 = inlined_call_operand.hbm [shape: bf16[2,32,48], index: 1, kind: input, shape index: {}]   ;;  %s1761_s2 = inlined_call_operand.vmem [shape: f32[2,1,48], index: 2, kind: input, shape index: {}]   ;;  %s1762_s3 = inlined_call_operand.hbm [shape: bf16[2,16,32], index: 3, kind: input, shape index: {}]   ;;  %s1763_s4 = inlined_call_operand.vmem [shape: f32[1,32], index: 4, kind: input, shape index: {}]   ;;  %s1764_s5 = inlined_call_operand.hbm [shape: f32[2,8,32], index: 5, kind: output, shape index: {0}]   ;;  %s1765_s6 = inlined_call_operand.hbm [shape: f32[2,2,8,8], index: 6, kind: output, shape index: {1}]  }
   0x1   :  { %1789 = sst [smem:[#allocation30_spill]] %s1760_s1 }
   0x2   :  { %1790 = sst [smem:[#allocation31_spill]] %s1761_s2 }
   0x3   :  { %1791 = sst [smem:[#allocation32_spill]] %s1763_s4 }
   0x4   :  { %1792 = sst [smem:[#allocation33_spill]] %s1764_s5 }
   0x5   :  { %1793 = sst [smem:[#allocation34_spill]] %s1765_s6 }
   0x6   :  { %12 = vsyncpa [#allocation3], 0 }
   0x7   :  { %14 = vsyncpa [#allocation3 + $0x1], 0 }
   0x8   :  { %15 = vsyncpa [#allocation6], 0 }
   0x9   :  { %17 = vsyncpa [#allocation6 + $0x1], 0 }
   0xa   :  { %18 = vsyncpa [#allocation4], 0 }
   0xb   :  { %20 = vsyncpa [#allocation4 + $0x1], 0 }
   0xc   :  { %21 = vsyncpa [#allocation10], 0 }
   0xd   :  { %23 = vsyncpa [#allocation10 + $0x1], 0  ;;  %s1370_s21 = smov 0   ;;  %s1372_s22 = smov 0  }
   0xe   :  { %s1374_s23 = smov 0   ;;  %s1376_s24 = smov 0  }
   0xf   :  { %s1378_s25 = smov 0   ;;  %s1380_s26 = smov 0  }
  0x10   :  { %s1382_s27 = smov 0   ;;  %s1384_s28 = smov 0  }
  0x11   :  { %s1386_s29 = smov 0   ;;  %s1388_s30 = smov 0  }
  0x12   :  { %s1390_s7 = smov 0   ;;  %s1392_s8 = smov 0  }
  0x13   :  { %s1394_s9 = smov 0   ;;  %s1396_s10 = smov 0  }
  0x14 LB: > { %1794 = sst [smem:[#allocation15_spill]] %s1278_s23  ;;  %p56_p0 = scmp.eq.s32.totalorder %s1322_s10, 0  ;;  %s1322_s10 = sphi %s1396_s10, %s29_s10   ;;  %s1318_s9 = sphi %s1394_s9, %s1852_s9   ;;  %s1314_s8 = sphi %s1392_s8, %s1863_s8   ;;  %s1310_s7 = sphi %s1390_s7, %s1862_s7   ;;  %s1306_s30 = sphi %s1388_s30, %s1861_s30   ;;  %s1302_s29 = sphi %s1386_s29, %s1860_s29   ;;  %s1298_s28 = sphi %s1384_s28, %s1859_s28   ;;  %s1294_s27 = sphi %s1382_s27, %s1858_s27   ;;  %s1290_s26 = sphi %s1380_s26, %s1847_s26   ;;  %s1286_s25 = sphi %s1378_s25, %s1857_s25   ;;  %s1282_s24 = sphi %s1376_s24, %s1856_s24   ;;  %s1278_s23 = sphi %s1374_s23, %s1845_s23   ;;  %s1274_s22 = sphi %s1372_s22, %s1855_s22   ;;  %s1270_s21 = sphi %s1370_s21, %s1854_s21  }
  0x15   : > { %1795 = sst [smem:[#allocation16_spill]] %s1290_s26  ;;  %p81_p1 = scmp.ne.s32.totalorder %s1290_s26, %s1286_s25 }
  0x16   : > { %1796 = sst [smem:[#allocation17_spill]] %s1294_s27  ;;  %p87_p2 = scmp.ne.s32.totalorder %s1286_s25, %s1282_s24 }
  0x17   : > { %1797 = sst [smem:[#allocation18_spill]] %s1302_s29  ;;  %p1774_p3 = scmp.lt.s32.totalorder %s1322_s10, 4 }
  0x18   : > { %1798 = sst [smem:[#allocation19_spill]] %s1306_s30  ;;  %p83_p4 = por %p81_p1, %p56_p0 }
  0x19   : > { %1799 = sst [smem:[#allocation20_spill]] %s1310_s7  ;;  %s259_s12 = sand.u32 1, %s1322_s10  }
  0x1a   : > { %1800 = sst [smem:[#allocation21_spill]] %s1318_s9  ;;  %s1767_s13 = sand.u32 1, %s1290_s26  }
  0x1b   : > { %s840_s14 = sshll.u32 %s1767_s13, 4  ;;  %s869_s15 = sshll.u32 %s1314_s8, 8 }
  0x1c   : > { %s1801_s1 = sld [smem:[#allocation30_spill]]  ;;  %s263_s19 = scalar_lea.vmem [#allocation5], %s840_s14 }
  0x1d   : > { %s270_s20 = sshll.u32 %s263_s19, 4  ;;  %p1459_p5 = pnand %p1774_p3, %p83_p4  ;;  %s271_s20 = int_to_ptr.vmem [resolvable:$true] %s270_s20 }
  0x1e   : > { %s1463_s11 = scalar_lea.sflag [#allocation6], %s259_s12  ;;  %s1073_s13 = scalar_lea.vmem %s271_s20, 256 }
  0x1f   : > { %p1773_p6 = pneg %p1459_p5  ;;  %p1074_p7 = scmp.ne.s32.totalorder %s271_s20, %s1073_s13 }
  0x20   : > { %s1324_s14 = smov [#allocation5]  }
  0x21   : > { %p1076_p8 = pnand %p1074_p7, %p1773_p6 }
  0x22   : > { %s269_s18 = scalar_lea.hbm %s1801_s1, %s869_s15  ;;  %s1078_s15 = sshll.u32 %s1324_s14, 4  ;;  %s1079_s15 = int_to_ptr.vmem [resolvable:$false] %s1078_s15 }
  0x23   : > { %p1077_p9 = pneg %p1076_p8  ;;  %s1080_s16 = scalar_lea.vmem %s1079_s15, 512 }
  0x24   : > { %p1081_p10 = scmp.lt.s32.totalorder %s271_s20, %s1079_s15  ;;  %p1082_p11 = scmp.lt.s32.totalorder %s1080_s16, %s1073_s13 }
  0x26   : > { %p1083_p12 = por %p1082_p11, %p1081_p10 }
  0x28   : > { %p1084_p13 = pnand %p1083_p12, %p1077_p9 }
  0x2a   : > { %1087 = shalt.err (!%p1084_p13)
}
  0x2b   : > { %s1768_s17 = smov 64   ;;  %s1769_s12 = smov 4  }
  0x2c   : > { %922 = dma.hbm_to_vmem [thread:$0]  (!%p1459_p5), %s269_s18, 256, %s271_s20, %s1463_s11, %s1768_s17, %s1768_s17, %s1769_s12  }
  0x2d   : > { %s1803_s13 = sand.u32 1, %s1290_s26   ;;  %p846_p1 = scmp.ge.s32.totalorder %s1322_s10, 1 }
  0x2e   : > { %s843_s19 = sshll.u32 %s1803_s13, 3  ;;  %p305_p4 = scmp.lt.s32.totalorder %s1322_s10, 5 }
  0x2f   : > { %s290_s14 = scalar_lea.vmem [#allocation7], %s843_s19  ;;  %s1487_s1 = sadd.s32 4294967295, %s1322_s10  }
  0x30   : > { %s1480_s15 = sshll.u32 %s290_s14, 4  ;;  %p1482_p7 = pnand %p846_p1, %p305_p4  ;;  %s298_s15 = int_to_ptr.vmem [resolvable:$true] %s1480_s15 }
  0x31   : > { %s835_s18 = sadd.s32 4294967294, %s1322_s10   ;;  %s38_s20 = sadd.s32 1, %s1314_s8 }
  0x32   : > { %s41_s13 = sadd.s32 1, %s1318_s9  ;;  %p39_p8 = scmp.ge.s32.totalorder %s38_s20, 2 }
  0x33   : > { %s48_s19 = sadd.s32 1, %s1302_s29  ;;  %p55_p9 = scmp.ne.s32.totalorder %s1302_s29, %s1298_s28 }
  0x34   : > { %p61_p10 = scmp.ne.s32.totalorder %s1298_s28, %s1294_s27  ;;  %s1865_s20 = smov (%p39_p8, %s38_s20), 0 }
  0x35   : > { %1805 = sst [smem:[#allocation22_spill]] %s1865_s20  ;;  %s1867_s13 = smov (!%p39_p8, %s41_s13), %s1318_s9 }
  0x36   : > { %p1505_p11 = por %p56_p0, %p55_p9  ;;  %p62_p12 = scmp.eq.s32.totalorder %s1487_s1, 0 }
  0x37   : > { %p43_p13 = scmp.ge.s32.totalorder %s1867_s13, 2  ;;  %s71_s17 = ssub.s32 %s1314_s8, %s1865_s20 }
  0x38   : > { %p1515_p1 = por %p62_p12, %p61_p10  ;;  %p72_p4 = scmp.eq.s32.totalorder %s71_s17, 0 }
  0x39   : > { %s1869_s13 = smov (%p43_p13, %s1867_s13), 0  ;;  %s1809_s5 = sadd.s32 1, %s1290_s26 }
  0x3a   : > { %1808 = sst [smem:[#allocation23_spill]] %s1869_s13  ;;  %s45_s4 = ssub.s32 %s1318_s9, %s1869_s13 }
  0x3b   : > { %s1524_s7 = scalar_select %p72_p4, %s1290_s26, %s1809_s5  }
  0x3c   : > { %p1531_p0 = por %p87_p2, %p62_p12  ;;  %p46_p8 = scmp.eq.s32.totalorder %s45_s4, 0 }
  0x3d   : > { %1810 = sst [smem:[#allocation24_spill]] %s1524_s7  ;;  %p184_p6 = scmp.eq.s32.totalorder %s1487_s1, 3 }
  0x3e   : > { %s1811_s20 = scalar_select %p1531_p0, 1, 0 }
  0x3f   : > { %p190_p3 = scmp.eq.s32.totalorder %s835_s18, 3  ;;  %s198_s2 = sor.u32 %s71_s17, %s45_s4 }
  0x40   : > { %s1537_s30 = scalar_select %p46_p8, %s1302_s29, %s48_s19  }
  0x41   : > { %p1542_p13 = por %p184_p6, %p55_p9  ;;  %p1549_p4 = por %p190_p3, %p61_p10 }
  0x42   : > { %1812 = sst [smem:[#allocation25_spill]] %s1537_s30  ;;  %p199_p2 = scmp.eq.s32.totalorder %s198_s2, 0 }
  0x43   : > { %s1813_s5 = scalar_select %p1542_p13, 1, 0 }
  0x44   : > { %s1815_s24 = scalar_select %p1549_p4, 1, 0 }
  0x45   : > { %1814 = sst [smem:[#allocation26_spill]] %s1813_s5  ;;  %s201_s13 = sadd.s32 1, %s1278_s23 }
  0x46   : > { %1816 = sst [smem:[#allocation27_spill]] %s1815_s24  ;;  %p211_p12 = scmp.ne.s32.totalorder %s1278_s23, %s1274_s22 }
  0x47   : > { %p217_p0 = scmp.ne.s32.totalorder %s1274_s22, %s1270_s21  ;;  %s241_s19 = sand.u32 1, %s1302_s29  }
  0x48   : > { %s1559_s4 = scalar_select %p199_p2, %s1278_s23, %s201_s13  }
  0x49   : > { %p1561_p8 = por %p211_p12, %p184_p6  ;;  %p1565_p9 = por %p217_p0, %p190_p3 }
  0x4a   : > { %1817 = sst [smem:[#allocation28_spill]] %s1559_s4  ;;  %s839_s30 = sshll.u32 %s1318_s9, 6 }
  0x4b   : > { %s1818_s17 = scalar_select %p1561_p8, 1, 0 }
  0x4c   : > { %s1819_s18 = scalar_select %p1565_p9, 1, 0 }
  0x4d   : > { %s838_s7 = sshll.u32 %s241_s19, 2  ;;  %s250_s2 = scalar_lea.hbm %s1759_s0, %s839_s30 }
  0x4e   : > { %1820 = sst [smem:[#allocation29_spill]] %s1819_s18  ;;  %s245_s27 = scalar_lea.vmem [#allocation2], %s838_s7 }
  0x4f   : > { %s252_s5 = sshll.u32 %s245_s27, 4  ;;  %p1821_p10 = scmp.lt.s32.totalorder %s1322_s10, 4  ;;  %s253_s5 = int_to_ptr.vmem [resolvable:$true] %s252_s5 }
  0x50   : > { %s870_s4 = sshll.u32 %s1314_s8, 7  ;;  %s242_s29 = scalar_lea.sflag [#allocation3], %s241_s19 }
  0x51   : > { %p1578_p2 = pnand %p1821_p10, %p1505_p11  ;;  %s1586_s9 = scalar_lea.hbm %s1762_s3, %s870_s4 }
  0x52   : > { %s1101_s26 = scalar_lea.vmem %s253_s5, 64  ;;  %s1327_s27 = smov [#allocation2]  }
  0x53   : > { %p1090_p3 = pneg %p1578_p2  ;;  %p1102_p6 = scmp.ne.s32.totalorder %s253_s5, %s1101_s26 }
  0x54   : > { %s1106_s30 = sshll.u32 %s1327_s27, 4  ;;  %s1107_s30 = int_to_ptr.vmem [resolvable:$false] %s1106_s30 }
  0x55   : > { %p1104_p0 = pnand %p1102_p6, %p1090_p3  ;;  %s1108_s7 = scalar_lea.vmem %s1107_s30, 128 }
  0x56   : > { %p1109_p11 = scmp.lt.s32.totalorder %s253_s5, %s1107_s30  ;;  %p1110_p10 = scmp.lt.s32.totalorder %s1108_s7, %s1101_s26 }
  0x57   : > { %p1105_p12 = pneg %p1104_p0 }
  0x58   : > { %p1111_p9 = por %p1110_p10, %p1109_p11 }
  0x5a   : > { %p1112_p4 = pnand %p1111_p9, %p1105_p12 }
  0x5c   : > { %1115 = shalt.err (!%p1112_p4)
}
  0x5d   : > { %919 = dma.hbm_to_vmem [thread:$0]  (!%p1578_p2), %s250_s2, 64, %s253_s5, %s242_s29  }
  0x5e   : > { %s1129_s23 = scalar_lea.vmem %s298_s15, 128  ;;  %p1823_p3 = pneg %p1459_p5 }
  0x5f   : > { %p1130_p8 = scmp.ne.s32.totalorder %s298_s15, %s1129_s23  ;;  %s1328_s14 = smov [#allocation7]  }
  0x60   : > { %s1134_s24 = sshll.u32 %s1328_s14, 4  ;;  %s1135_s24 = int_to_ptr.vmem [resolvable:$false] %s1134_s24 }
  0x61   : > { %p1132_p6 = pnand %p1130_p8, %p1823_p3  ;;  %s1136_s4 = scalar_lea.vmem %s1135_s24, 256 }
  0x62   : > { %p1137_p13 = scmp.lt.s32.totalorder %s298_s15, %s1135_s24  ;;  %p1138_p11 = scmp.lt.s32.totalorder %s1136_s4, %s1129_s23 }
  0x63   : > { %p1133_p0 = pneg %p1132_p6 }
  0x64   : > { %p1139_p9 = por %p1138_p11, %p1137_p13 }
  0x66   : > { %p1140_p4 = pnand %p1139_p9, %p1133_p0 }
  0x68   : > { %1143 = shalt.err (!%p1140_p4)
}
  0x69   : > { %s1824_s18 = smov 4   ;;  %s1825_s29 = smov 64  }
  0x6a   : > { %925 = dma.hbm_to_vmem [thread:$0]  (!%p1459_p5), %s1586_s9, 128, %s298_s15, %s1463_s11, %s1825_s29, %s1825_s29, %s1824_s18  }
  0x6b   : > { %309 = sbr.rel (%p1482_p7) target bundleno = 1404 (0x57c), region = 40  ;;  %s1606_s5 = sand.u32 (!%p1482_p7), 1, %s1298_s28  }
  0x6c   : > { %s847_s19 = sshll.u32 (!%p1482_p7), %s1606_s5, 2  ;;  %s312_s2 = scalar_lea.sflag (!%p1482_p7), [#allocation3], %s1606_s5 }
  0x6d   : > { %s315_s13 = scalar_lea.vmem (!%p1482_p7), [#allocation2], %s847_s19 }
  0x70   : > { %1253 = dma.done.wait (%p1515_p1), %s312_s2, 64  }
  0x71   : > { %1255 = vsyncadd (%p1515_p1), %s312_s2, 4294967232  ;;  %s320_s6 = sand.u32 1, %s1487_s1   ;;  %s322_s9 = sand.u32 1, %s1286_s25  }
  0x72   : > { %s848_s11 = sshll.u32 %s322_s9, 4  ;;  %s321_s15 = scalar_lea.sflag [#allocation6], %s320_s6 }
  0x73   : > { %s324_s16 = scalar_lea.vmem [#allocation5], %s848_s11  ;;  %p1826_p5 = scmp.ne.s32.totalorder %s1811_s20, 0 }
  0x75   : > { %1257 = dma.done.wait (%p1826_p5), %s321_s15, 384  }
  0x76   : > { %1259 = vsyncadd (%p1826_p5), %s321_s15, 4294966912  ;;  %s850_s26 = sshll.u32 %s1606_s5, 3  ;;  %v1329_v0 = vmov 0.0   ;;  %s1827_s12 = sld [smem:[#allocation19_spill]]  ;;  %vm1330_vm0 = vmmov 0   ;;  %v1053_v1 = vld [vmem:[%s324_s16 + $0x8] sm:$0xff]  }
  0x77   : > { %880 = vmatprep.subr.bf16.mxu0 %v1329_v0  ;;  %884 = vmatprep.mubr.msk.bf16.mxu0 %vm1330_vm0, %v1329_v0  ;;  %v1054_v2 = vld [vmem:[%s324_s16] sm:$0xff]   ;;  %v384_v3 = vld [vmem:[%s315_s13] sm:$0xf]  ;;  %vm408_vm1 = vcmask 261120   ;;  %s1828_s30 = sld [smem:[#allocation31_spill]]  ;;  %s1331_s23 = smov 112  }
  0x78   : > { %888 = vmatprep.subr.bf16.mxu1 %v1329_v0  ;;  %890 = vmatprep.mubr.msk.bf16.mxu1 %vm1330_vm0, %v1329_v0  ;;  %vm456_vm2 = vcmask 130048   ;;  %vm503_vm3 = vcmask 64512   ;;  %s1332_s14 = smov 96   ;;  %s849_s24 = sshll.u32 %s322_s9, 3  ;;  %vm522_vm4 = vcmask 1043456  }
  0x79   : > { %881 = vmatpush3.bf16.msra.mxu0 %v1053_v1  ;;  %s333_s4 = scalar_lea.vmem [#allocation7], %s849_s24  ;;  %s377_s18 = sand.u32 1, %s1274_s22  }
  0x7a   : > { %882 = vmatprep.subr.bf16.mxu0 %v1329_v0  ;;  %v1055_v23 = vld [vmem:[%s333_s4] sm:$0xff]   ;;  %s1642_s29 = sshll.u32 %s377_s18, 3  ;;  %s372_s2 = scalar_lea.vmem [#allocation8], %s850_s26 }
  0x7b   : > { %s379_s19 = scalar_lea.vmem [#allocation9], %s1642_s29 }
  0x7c   : > { %p380_p7 = scmp.lt.s32.totalorder %s1827_s12, 1  ;;  %p860_p1 = scmp.ne.s32.totalorder %s1827_s12, 0 }
  0x7d   : > { %883 = vmatpush3.bf16.msra.mxu0 %v1054_v2  ;;  %s1829_s9 = sld [smem:[#allocation32_spill]] (!%p860_p1) }
  0x7e   : > { %894 = vmatprep.subr.bf16.mxu0 %v1329_v0  ;;  %s381_s1 = scalar_select %p380_p7, %s1827_s12, 1 }
  0x80   : > { %885 = vmatmul.mubr.msk.bf16.vlgmr.msra.gmra.mxu0 %vm408_vm1, %v384_v3  ;;  %s382_s7 = scalar_lea.vmem %s1828_s30, %s381_s1 }
  0x81   : > { %896 = vmatprep.mubr.msk.bf16.mxu0 %vm1330_vm0, %v1329_v0  ;;  %v852_v4 = vld [vmem:[%s382_s7] ss:$0 sm:$0xff] }
 0x140   : > { %v446_v5 = vpop.f32.mrf.mxu0 }
 0x141   : > { %v447_v6 = vadd.f32 %v852_v4, %v446_v5 }
 0x142   : > { %v886_v7 = vpop.f32.mrf.mxu0 }
 0x143   : > { %v452_v8 = vpack.c.bf16 %v447_v6, %v447_v6 }
 0x144   : > { %v449_v9 = vpop.f32.mrf.mxu0 }
 0x145   : > { %454 = vrot.lane.b32.xlu0 %v452_v8, %s1331_s23 }
 0x146   : > { %v887_v10 = vpop.f32.mrf.mxu0 }
 0x1b7   : > { %v455_v11 = vpop.permute.xlu0 %454 }
 0x1b8   : > { %v461_v12 = vsel %vm456_vm2, %v455_v11, 0 }
 0x1b9   : > { %889 = vmatpush3.bf16.xpose.msra.mxu1 %v461_v12 }
 0x1ba   : > { %900 = vmatprep.subr.bf16.mxu1 %v1329_v0 }
 0x1c0   : > { %891 = vmatmul.mubr.msk.bf16.vlgmr.msra.gmra.mxu1 %vm456_vm2, %v452_v8 }
 0x1c1   : > { %902 = vmatprep.mubr.msk.bf16.mxu1 %vm1330_vm0, %v1329_v0  ;;  %901 = vmatpush3.bf16.msra.mxu1 %v1055_v23 }
 0x280   : > { %v497_v13 = vpop.f32.mrf.mxu1 }
 0x281   : > { %v504_v14 = vsel %vm503_vm3, %v497_v13, -inf }
 0x282   : > { %505 = vmax.xlane.f32.xlu0 %v504_v14  ;;  %v892_v15 = vpop.f32.mrf.mxu1 }
 0x284   : > { %v500_v16 = vpop.f32.mrf.mxu1 }
 0x286   : > { %v893_v17 = vpop.f32.mrf.mxu1 }
 0x30b   : > { %v506_v18 = vpop.xlane.xlu0 %505 }
 0x30c   : > { %v507_v19 = vsub.f32 %v497_v13, %v506_v18 }
 0x30e   : > { %v508_v20 = vmul.f32 1.442695, %v507_v19 }
 0x310   : > { %1056 = vpow2.f32 %v508_v20 }
 0x31d   : > { %v1057_v21 = vpop.eup %1056 }
 0x31e   : > { %v510_v22 = vsel %vm503_vm3, %v1057_v21, 0.0 }
 0x31f   : > { %511 = vadd.xlane.f32.xlu1 %v510_v22 }
 0x330   : > { %517 = vrot.lane.b32.xlu1 %v452_v8, %s1332_s14 }
 0x3a8   : > { %v512_v24 = vpop.xlane.xlu1 %511 }
 0x3a9   : > { %1058 = vrcp.f32 %v512_v24 }
 0x3ac   : > { %v518_v25 = vpop.permute.xlu1 %517 }
 0x3ad   : > { %v524_v26 = vsel %vm522_vm4, %v518_v25, 0 }
 0x3ae   : > { %895 = vmatpush3.bf16.msra.mxu0 %v524_v26 }
 0x3b6   : > { %v1059_v27 = vpop.eup %1058 }
 0x3b7   : > { %v514_v28 = vmul.f32 %v1059_v27, %v1057_v21 }
 0x3b9   : > { %515 = vst.msk [vmem:[%s379_s19] sm:$0xff] %vm503_vm3, %v514_v28  ;;  %v516_v29 = vpack.c.bf16 %v514_v28, %v514_v28 }
 0x3bb   : > { %897 = vmatmul.mubr.msk.bf16.vlgmr.msra.gmra.mxu0 %vm503_vm3, %v516_v29 }
 0x47b   : > { %v560_v30 = vpop.f32.mrf.mxu0 }
 0x47c   : > { %v566_v31 = vpack.c.bf16 %v560_v30, %v560_v30 }
 0x47d   : > { %v898_v32 = vpop.f32.mrf.mxu0 }
 0x47e   : > { %903 = vmatmul.mubr.msk.bf16.vlgmr.msra.gmra.mxu1 %vm456_vm2, %v566_v31 }
 0x47f   : > { %v563_v33 = vpop.f32.mrf.mxu0 }
 0x481   : > { %v899_v34 = vpop.f32.mrf.mxu0 }
 0x53e   : > { %v612_v35 = vpop.f32.mrf.mxu1 }
 0x540   : > { %v904_v36 = vpop.f32.mrf.mxu1  ;;  %621 = sbr.rel (%p860_p1) target bundleno = 1351 (0x547), region = 56 }
 0x542   : > { %v615_v37 = vpop.f32.mrf.mxu1 }
 0x544   : > { %v905_v38 = vpop.f32.mrf.mxu1 }
 0x545   : > { %v861_v39 = vld [vmem:[%s1829_s9] ss:$0 sm:$0xff] }
 0x546   : > { %629 = vst.msk [vmem:[%s372_s2] sm:$0xff] %vm408_vm1, %v861_v39 }
 0x547 PF: > { %s1830_s11 = sld [smem:[#allocation20_spill]]  ;;  %s652_s12 = sshll.u32 %s372_s2, 4  ;;  %s1661_s12 = int_to_ptr.vmem [resolvable:$true] %s652_s12 }
 0x548   : > { %s1831_s15 = sld [smem:[#allocation26_spill]]  ;;  %s667_s7 = sshll.u32 %s379_s19, 4  ;;  %s668_s7 = int_to_ptr.vmem [resolvable:$true] %s667_s7 }
 0x549   : > { %s1832_s26 = sld [smem:[#allocation33_spill]]  ;;  %s634_s23 = scalar_lea.sflag [#allocation4], %s1606_s5 }
 0x54a   : > { %s1144_s24 = scalar_lea.vmem %s1661_s12, 128  ;;  %s1333_s4 = smov [#allocation8]  }
 0x54b   : > { %p1145_p13 = scmp.ne.s32.totalorder %s1661_s12, %s1144_s24  ;;  %s1148_s29 = sshll.u32 %s1333_s4, 4  ;;  %s1149_s29 = int_to_ptr.vmem [resolvable:$false] %s1148_s29 }
 0x54c   : > { %s1150_s13 = scalar_lea.vmem %s1149_s29, 256  ;;  %p1151_p10 = scmp.lt.s32.totalorder %s1661_s12, %s1149_s29 }
 0x54d   : > { %v630_v40 = vld [vmem:[%s372_s2] sm:$0xff]  ;;  %s864_s16 = sshll.u32 %s1830_s11, 7  ;;  %s865_s30 = sshll.u32 %s1830_s11, 1 }
 0x54e   : > { %v631_v41 = vadd.f32 %v630_v40, %v612_v35  ;;  %p1834_p8 = scmp.ne.s32.totalorder %s1831_s15, 0  ;;  %p1152_p3 = scmp.lt.s32.totalorder %s1150_s13, %s1144_s24 }
 0x54f   : > { %s1833_s14 = smov %s1832_s26  ;;  %s1659_s27 = scalar_lea.hbm %s1832_s26, %s864_s16 }
 0x550   : > { %632 = vst.msk [vmem:[%s372_s2] sm:$0xff] %vm408_vm1, %v631_v41  ;;  %p1146_p2 = pnand %p1145_p13, %p1834_p8  ;;  %p1153_p6 = por %p1152_p3, %p1151_p10 }
 0x552   : > { %p1147_p12 = pneg %p1146_p2 }
 0x554   : > { %p1154_p0 = pnand %p1153_p6, %p1147_p12 }
 0x556   : > { %1157 = shalt.err (!%p1154_p0)
}
 0x557   : > { %s1158_s19 = scalar_lea.hbm %s1659_s27, 128  ;;  %s1162_s6 = scalar_lea.hbm %s1833_s14, 256 }
 0x558   : > { %p1159_p11 = scmp.ne.s32.totalorder %s1659_s27, %s1158_s19  ;;  %p1163_p5 = scmp.lt.s32.totalorder %s1659_s27, %s1833_s14 }
 0x559   : > { %p1164_p7 = scmp.lt.s32.totalorder %s1162_s6, %s1158_s19 }
 0x55a   : > { %p1160_p9 = pnand %p1159_p11, %p1834_p8 }
 0x55b   : > { %p1165_p1 = por %p1164_p7, %p1163_p5 }
 0x55c   : > { %p1161_p4 = pneg %p1160_p9 }
 0x55e   : > { %p1166_p13 = pnand %p1165_p1, %p1161_p4 }
 0x560   : > { %1169 = shalt.err (!%p1166_p13)
}
 0x561   : > { %s1835_s16 = sld [smem:[#allocation19_spill]]  ;;  %s639_s13 = scalar_lea.sflag [#allocation10], %s377_s18 }
 0x562   : > { %912 = dma.vmem_to_hbm [thread:$0]  (%p1834_p8), %s1661_s12, 128, %s1659_s27, %s634_s23  }
 0x563   : > { %s1836_s4 = sld [smem:[#allocation34_spill]]  ;;  %s1170_s19 = scalar_lea.vmem %s668_s7, 128 }
 0x564   : > { %p1171_p2 = scmp.ne.s32.totalorder %s668_s7, %s1170_s19  ;;  %p1837_p12 = scmp.ne.s32.totalorder %s1818_s17, 0 }
 0x565   : > { %s1334_s15 = smov [#allocation9]  }
 0x566   : > { %p1172_p10 = pnand %p1171_p2, %p1837_p12  ;;  %s1174_s5 = sshll.u32 %s1334_s15, 4  ;;  %s1175_s5 = int_to_ptr.vmem [resolvable:$false] %s1174_s5 }
 0x567   : > { %s663_s1 = sadd.s32 %s1835_s16, %s865_s30  ;;  %s1176_s2 = scalar_lea.vmem %s1175_s5, 256 }
 0x568   : > { %s866_s20 = sshll.u32 %s663_s1, 7  ;;  %p1173_p3 = pneg %p1172_p10 }
 0x569   : > { %s665_s29 = scalar_lea.hbm %s1836_s4, %s866_s20  ;;  %p1177_p6 = scmp.lt.s32.totalorder %s668_s7, %s1175_s5 }
 0x56a   : > { %p1178_p8 = scmp.lt.s32.totalorder %s1176_s2, %s1170_s19 }
 0x56c   : > { %p1179_p0 = por %p1178_p8, %p1177_p6 }
 0x56e   : > { %p1180_p11 = pnand %p1179_p0, %p1173_p3 }
 0x570   : > { %1183 = shalt.err (!%p1180_p11)
}
 0x571   : > { %s1184_s27 = scalar_lea.hbm %s665_s29, 128  ;;  %s1188_s30 = scalar_lea.hbm %s1836_s4, 512 }
 0x572   : > { %p1185_p9 = scmp.ne.s32.totalorder %s665_s29, %s1184_s27  ;;  %p1189_p7 = scmp.lt.s32.totalorder %s665_s29, %s1836_s4 }
 0x573   : > { %p1190_p1 = scmp.lt.s32.totalorder %s1188_s30, %s1184_s27 }
 0x574   : > { %p1186_p4 = pnand %p1185_p9, %p1837_p12 }
 0x575   : > { %p1191_p13 = por %p1190_p1, %p1189_p7 }
 0x576   : > { %p1187_p5 = pneg %p1186_p4 }
 0x578   : > { %p1192_p2 = pnand %p1191_p13, %p1187_p5 }
 0x57a   : > { %1195 = shalt.err (!%p1192_p2)
}
 0x57b   : > { %913 = dma.vmem_to_hbm [thread:$0]  (%p1837_p12), %s668_s7, 128, %s665_s29, %s639_s13  }
 0x57c PF: > { %s1838_s9 = sld [smem:[#allocation17_spill]]  ;;  %p934_p10 = scmp.ge.s32.totalorder %s1322_s10, 2 }
 0x57d   : > { %s1839_s11 = sld [smem:[#allocation27_spill]] }
 0x582   : > { %s679_s16 = sand.u32 1, %s1838_s9  }
 0x583   : > { %p1840_p3 = scmp.ne.s32.totalorder %s1839_s11, 0  ;;  %s680_s1 = scalar_lea.sflag [#allocation4], %s679_s16 }
 0x585   : > { %p927_p6 = pnand %p934_p10, %p1840_p3 }
 0x587   : > { %p928_p8 = pneg %p927_p6 }
 0x589   : > { %1261 = dma.done.wait (%p928_p8), %s680_s1, 128  }
 0x58a   : > { %1263 = vsyncadd (%p928_p8), %s680_s1, 4294967168  ;;  %s1841_s20 = sld [smem:[#allocation29_spill]]  ;;  %s688_s26 = sand.u32 1, %s1270_s21  }
 0x58b   : > { %s689_s17 = scalar_lea.sflag [#allocation10], %s688_s26 }
 0x590   : > { %p1842_p0 = scmp.ne.s32.totalorder %s1841_s20, 0 }
 0x592   : > { %p930_p11 = pnand %p934_p10, %p1842_p0 }
 0x594   : > { %p931_p9 = pneg %p930_p11 }
 0x596   : > { %1265 = dma.done.wait (%p931_p9), %s689_s17, 128  }
 0x597   : > { %1267 = vsyncadd (%p931_p9), %s689_s17, 4294967168  ;;  %s29_s10 = sadd.s32 1, %s1322_s10   ;;  %s1844_s24 = sld [smem:[#allocation15_spill]] }
 0x598   : > { %p1712_p12 = scmp.ge.s32.totalorder %s29_s10, 6   ;;  %s1845_s23 = sld [smem:[#allocation28_spill]] }
 0x599   : > { %s1846_s29 = sld [smem:[#allocation16_spill]]  ;;  %s1854_s21 = smov %s1274_s22 }
 0x59a   : > { %s1847_s26 = sld [smem:[#allocation24_spill]]  ;;  %s1858_s27 = smov %s1298_s28 }
 0x59b   : > { %s1848_s13 = sld [smem:[#allocation18_spill]]  ;;  %s1861_s30 = smov %s1314_s8 }
 0x59c   : > { %s1849_s19 = sld [smem:[#allocation25_spill]] }
 0x59d   : > { %s1850_s15 = sld [smem:[#allocation21_spill]]  ;;  %s1855_s22 = smov %s1844_s24 }
 0x59e   : > { %s1851_s5 = sld [smem:[#allocation22_spill]]  ;;  %s1856_s24 = smov %s1286_s25 }
 0x59f   : > { %s1852_s9 = sld [smem:[#allocation23_spill]]  ;;  %s1857_s25 = smov %s1846_s29 }
 0x5a0   :  { %28 = sbr.rel (!%p1712_p12) target bundleno = 20 (0x14), region = 133 }
 0x5a1   : > { %s1859_s28 = smov %s1848_s13 }
 0x5a2   : > { %s1860_s29 = smov %s1849_s19 }
 0x5a3   : > { %s1862_s7 = smov %s1850_s15 }
 0x5a4   : > { %s1863_s8 = smov %s1851_s5 }
 0x5a5   :  { %694 = vsyncpa [#allocation3], 1 }
 0x5a6   :  { %696 = vsyncpa [#allocation3 + $0x1], 1 }
 0x5a7   :  { %697 = vsyncpa [#allocation6], 1 }
 0x5a8   :  { %699 = vsyncpa [#allocation6 + $0x1], 1 }
 0x5a9   :  { %700 = vsyncpa [#allocation4], 1 }
 0x5aa   :  { %702 = vsyncpa [#allocation4 + $0x1], 1 }
 0x5ab   :  { %703 = vsyncpa [#allocation10], 1 }
 0x5ac   :  { %705 = vsyncpa [#allocation10 + $0x1], 1 }

</bundles_post_ra>
